<compile_context>
chip_gen: v7x
topology: tpu7x:2x2x1
jax: 0.10.0
libtpu: 0.0.40
codegen_flags: <defaults>
</compile_context>

<pallas_src>
import functools

import jax
import jax.numpy as jnp
import numpy as np
from jax import lax
from jax.experimental import pallas as pl
from jax.experimental.pallas import tpu as pltpu


def _tuba_kernel(scores_ref, logb_ref, out_ref,
                 m_acc, s_acc, tmax_ref, dsum_acc,
                 *, n: int, tm: int, r: int, steps: int, gu: int,
                 non_diag: bool):
    c = pl.program_id(0)          # row-range split (parallel across cores)
    i = pl.program_id(1)          # streaming step within the split
    g = tm // r                   # sublane groups per row slab
    nit = g // gu                 # loop iterations (gu groups per iteration)
    neg_inf = jnp.float32(-jnp.inf)
    tile_off = (c * steps + i) * tm          # first global row of this slab

    @pl.when(i == 0)
    def _init():
        m_acc[...] = jnp.full((r, n), neg_inf, jnp.float32)
        s_acc[...] = jnp.zeros((r, n), jnp.float32)
        dsum_acc[...] = jnp.zeros((1, 1), jnp.float32)

    # (row, col) in a group slice is on the global diagonal iff
    #   col == tile_off + group_start + row   <=>   diagpos == group_start
    col = lax.broadcasted_iota(jnp.int32, (r, n), 1)
    row = lax.broadcasted_iota(jnp.int32, (r, n), 0)
    diagpos = col - row - tile_off

    def load_group(start):
        xs = scores_ref[pl.ds(start, r), :].astype(jnp.float32)
        return xs - logb_ref[pl.ds(start, r), :]

    # ---- pass 1: fold per-lane tile max (+ diagonal sum) -------------------
    tmax_ref[...] = m_acc[...]

    def max_pair(p):
        base = p * (gu * r)
        if not isinstance(base, int):
            base = pl.multiple_of(base, gu * r)
        pmax = None
        dvals = None
        for u in range(gu):
            start = base + u * r
            xg = load_group(start)
            dmask = diagpos == start
            dv = jnp.where(dmask, xg, 0.0)
            dvals = dv if dvals is None else dvals + dv
            if non_diag:
                xg = jnp.where(dmask, neg_inf, xg)
            pmax = xg if pmax is None else jnp.maximum(pmax, xg)
        dsum_acc[...] = dsum_acc[...] + jnp.sum(dvals)
        tmax_ref[...] = jnp.maximum(tmax_ref[...], pmax)

    if nit <= 4:
        for p in range(nit):
            max_pair(p)
    else:
        @pl.loop(0, nit)
        def _(p):
            max_pair(p)

    # ---- rescale running exp-sum to the new running max --------------------
    m_old = m_acc[...]
    m_new = tmax_ref[...]
    scale = jnp.where(m_old == neg_inf, 0.0, jnp.exp(m_old - m_new))
    s_acc[...] = s_acc[...] * scale
    m_acc[...] = m_new

    # ---- pass 2: accumulate exp(x - m_new) ---------------------------------
    def sum_pair(p):
        base = p * (gu * r)
        if not isinstance(base, int):
            base = pl.multiple_of(base, gu * r)
        m_cur = tmax_ref[...]
        pe = None
        for u in range(gu):
            start = base + u * r
            xg = load_group(start)
            e = jnp.exp(xg - m_cur)
            if non_diag:
                # zero (not exp(-inf)) keeps the degenerate all-masked lane NaN-free
                e = jnp.where(diagpos == start, 0.0, e)
            pe = e if pe is None else pe + e
        s_acc[...] = s_acc[...] + pe

    if nit <= 4:
        for p in range(nit):
            sum_pair(p)
    else:
        @pl.loop(0, nit)
        def _(p):
            sum_pair(p)

    # ---- epilogue: single cross-lane reduce, write per-split partials ------
    @pl.when(i == steps - 1)
    def _finish():
        m_all = m_acc[...]
        gmax = jnp.max(m_all)
        terms = jnp.where(m_all == neg_inf, 0.0,
                          s_acc[...] * jnp.exp(m_all - gmax))
        total = jnp.sum(terms)
        dsum = jnp.sum(dsum_acc[...])
        ridx = lax.broadcasted_iota(jnp.int32, (8, 128), 0)
        blk = jnp.where(ridx == 0, dsum, jnp.where(ridx == 1, gmax, total))
        out_ref[...] = blk.astype(out_ref.dtype)


def _vmem_capacity_bytes():
    try:
        cap = int(pltpu.get_tpu_info().vmem_capacity_bytes)
        if cap > 0:
            return cap
    except Exception:
        pass
    return 64 * 1024 * 1024      # conservative fallback (v7x per-core VMEM)


def _r_for(tm, dtype_bytes):
    r_base = 8 if dtype_bytes >= 4 else (16 if dtype_bytes == 2 else 32)
    return r_base if tm % r_base == 0 else tm


def _vmem_bytes_estimate(tm, n, dtype_bytes):
    r = _r_for(tm, dtype_bytes)
    slab = 2 * tm * n * dtype_bytes           # double-buffered row slab
    logb = 2 * tm * 128 * 4                   # (tm, 1) baseline, lane-padded
    scratch = 3 * r * n * 4 + 4 * 1024        # m / s / tile-max accumulators
    return slab + logb + scratch + (2 << 20)  # headroom for vreg-sized temps


def _choose_tile(n, dtype_bytes, vmem_cap):
    """Largest row-tile (multiple of 128 dividing n) whose double-buffered
    working set fits the per-generation VMEM budget; prefer >= 2 row tiles so
    the pipeline overlaps and the 2-way split is possible."""
    if n % 128 != 0:
        return n
    budget = int(vmem_cap * 0.7)
    cands = [k * 128 for k in (8, 6, 4, 3, 2, 1) if n % (k * 128) == 0]
    for tm in cands:
        if n // tm >= 2 and _vmem_bytes_estimate(tm, n, dtype_bytes) <= budget:
            return tm
    for tm in cands:
        if _vmem_bytes_estimate(tm, n, dtype_bytes) <= budget:
            return tm
    return cands[-1]


def tuba_pallas(scores, log_baseline=0.0, *, non_diag=False, block_rows=None):
    """Pallas TPU implementation of TUBA.forward(scores, log_baseline)."""
    scores = jnp.asarray(scores)
    if scores.dtype not in (jnp.float32, jnp.bfloat16):
        scores = scores.astype(jnp.float32)
    n = scores.shape[0]
    assert scores.ndim == 2 and scores.shape[1] == n, "scores must be (n, n)"

    lb = jnp.asarray(log_baseline, jnp.float32)
    if lb.size == 1:
        logb = jnp.full((n, 1), lb.reshape(()), jnp.float32)
    else:
        logb = lb.reshape(n, 1).astype(jnp.float32)

    cap = _vmem_capacity_bytes()
    dbytes = jnp.dtype(scores.dtype).itemsize

    if block_rows is not None:
        tm = int(block_rows)
        if tm <= 0 or n % tm != 0 or (tm != n and tm % 128 != 0):
            tm = n
    else:
        tm = _choose_tile(n, dbytes, cap)

    r = _r_for(tm, dbytes)
    g = tm // r
    gu = 2 if (g % 2 == 0 and g >= 2) else 1

    num_tiles = n // tm
    num_splits = 2 if (num_tiles % 2 == 0 and num_tiles >= 2) else 1
    steps = num_tiles // num_splits

    est = _vmem_bytes_estimate(tm, n, dbytes)
    vmem_limit = max(est + (8 << 20), 32 << 20)
    vmem_limit = int(min(vmem_limit, cap))

    kernel = functools.partial(_tuba_kernel, n=n, tm=tm, r=r, steps=steps,
                               gu=gu, non_diag=non_diag)
    grid_spec = pltpu.PrefetchScalarGridSpec(
        num_scalar_prefetch=0,
        grid=(num_splits, steps),
        in_specs=[
            pl.BlockSpec((tm, n), lambda c, i: (c * steps + i, 0)),  # row slab
            pl.BlockSpec((tm, 1), lambda c, i: (c * steps + i, 0)),  # baseline
        ],
        out_specs=pl.BlockSpec((8, 128), lambda c, i: (c, 0)),
        scratch_shapes=[
            pltpu.VMEM((r, n), jnp.float32),   # running per-lane max
            pltpu.VMEM((r, n), jnp.float32),   # running per-lane exp-sum
            pltpu.VMEM((r, n), jnp.float32),   # per-step tile max (m_new)
            pltpu.VMEM((1, 1), jnp.float32),   # running diagonal sum
        ],
    )
    parts = pl.pallas_call(
        kernel,
        out_shape=jax.ShapeDtypeStruct((num_splits * 8, 128), jnp.float32),
        grid_spec=grid_spec,
        compiler_params=pltpu.CompilerParams(
            dimension_semantics=("parallel", "arbitrary"),
            vmem_limit_bytes=vmem_limit,
        ),
    )(scores, logb)

    # Combine the per-split partials (row 0: diag sum, row 1: max, row 2: exp-sum).
    parts = parts.reshape(num_splits, 8, 128)
    d_parts = parts[:, 0, 0]
    m_parts = parts[:, 1, 0]
    s_parts = parts[:, 2, 0]
    gmax = jnp.max(m_parts)
    total = jnp.sum(jnp.where(m_parts == -jnp.inf, 0.0,
                              s_parts * jnp.exp(m_parts - gmax)))
    joint = jnp.sum(d_parts) / jnp.float32(n)
    if non_diag:
        k = float(n * n - n) if n > 1 else 1.0
    else:
        k = float(n * n)
    lme = gmax + jnp.log(total) - jnp.log(jnp.float32(k))
    return -(joint + jnp.exp(lme) + 1.0)


def tuba_ref(scores, log_baseline=0.0, *, non_diag=False):
    """Pure-JAX reference mirroring the (intended) PyTorch semantics."""
    scores = jnp.asarray(scores, jnp.float32)
    n = scores.shape[0]
    mat = scores - jnp.broadcast_to(jnp.asarray(log_baseline, jnp.float32), (n, 1))
    joint = jnp.mean(jnp.diag(mat))
    if non_diag:
        lse_in = mat - jnp.diag(jnp.full((n,), jnp.inf, jnp.float32))
        k = float(n * n - n)
    else:
        lse_in = mat
        k = float(n * n)
    lme = jax.scipy.special.logsumexp(lse_in.flatten()) - jnp.log(k)
    return -(joint + jnp.exp(lme) + 1.0)


if __name__ == "__main__":
    key = jax.random.PRNGKey(0)
    k1, k2, k3, k4 = jax.random.split(key, 4)

    # Small single-tile path (n not a multiple of 128).
    n = 16
    scores = jax.random.normal(k1, (n, n), dtype=jnp.float32)
    log_baseline = 0.1 * jax.random.normal(k2, (n, 1), dtype=jnp.float32)
    for non_diag in (False, True):
        out = jax.block_until_ready(
            tuba_pallas(scores, log_baseline, non_diag=non_diag))
        ref = tuba_ref(scores, log_baseline, non_diag=non_diag)
        np.testing.assert_allclose(np.asarray(out), np.asarray(ref),
                                   rtol=1e-4, atol=1e-4)

    # Scalar-baseline default (log_baseline = 0.0).
    out0 = jax.block_until_ready(tuba_pallas(scores, 0.0, non_diag=False))
    ref0 = tuba_ref(scores, 0.0, non_diag=False)
    np.testing.assert_allclose(np.asarray(out0), np.asarray(ref0),
                               rtol=1e-4, atol=1e-4)

    # Multi-tile path: two row tiles -> 2-way split + dynamic group loop.
    n2 = 256
    scores2 = jax.random.normal(k3, (n2, n2), dtype=jnp.float32)
    for non_diag in (False, True):
        out2 = jax.block_until_ready(
            tuba_pallas(scores2, 0.0, non_diag=non_diag, block_rows=128))
        ref2 = tuba_ref(scores2, 0.0, non_diag=non_diag)
        np.testing.assert_allclose(np.asarray(out2), np.asarray(ref2),
                                   rtol=1e-4, atol=1e-4)

    # bf16 ingest path (halves HBM bytes; accumulation stays f32).
    scores2_bf = scores2.astype(jnp.bfloat16)
    out_bf = jax.block_until_ready(tuba_pallas(scores2_bf, 0.0, non_diag=False))
    ref_bf = tuba_ref(scores2_bf.astype(jnp.float32), 0.0, non_diag=False)
    np.testing.assert_allclose(np.asarray(out_bf), np.asarray(ref_bf),
                               rtol=1e-3, atol=1e-3)

    # Odd number of row tiles -> single split, multi-step streaming accumulation.
    n3 = 384
    scores3 = jax.random.normal(k4, (n3, n3), dtype=jnp.float32)
    log_baseline3 = 0.1 * jax.random.normal(k2, (n3, 1), dtype=jnp.float32)
    for non_diag in (False, True):
        out3 = jax.block_until_ready(
            tuba_pallas(scores3, log_baseline3, non_diag=non_diag))
        ref3 = tuba_ref(scores3, log_baseline3, non_diag=non_diag)
        np.testing.assert_allclose(np.asarray(out3), np.asarray(ref3),
                                   rtol=1e-4, atol=1e-4)

    print("KERNEL_OK")
</pallas_src>

<mosaic_0001>
module attributes {stable_mosaic.version = 11 : i64} {
  func.func @_tuba_kernel(%arg0: i32, %arg1: i32, %arg2: memref<16x16xf32, #tpu.memory_space<vmem>>, %arg3: memref<16x1xf32, #tpu.memory_space<vmem>>, %arg4: memref<8x128xf32, #tpu.memory_space<vmem>>, %arg5: memref<8x16xf32, #tpu.memory_space<vmem>>, %arg6: memref<8x16xf32, #tpu.memory_space<vmem>>, %arg7: memref<8x16xf32, #tpu.memory_space<vmem>>, %arg8: memref<1x1xf32, #tpu.memory_space<vmem>>) attributes {dimension_semantics = [#tpu.dimension_semantics<parallel>, #tpu.dimension_semantics<arbitrary>], iteration_bounds = array<i64: 1, 1>, scalar_prefetch = 0 : i64, scratch_operands = 4 : i64, tpu.core_type = #tpu.core_type<tc>, window_params = [{transform_indices = @transform_0, window_bounds = array<i64: 16, 16>}, {transform_indices = @transform_1, window_bounds = array<i64: 16, 1>}, {transform_indices = @transform_2, window_bounds = array<i64: 8, 128>}]} {
    %c1_i32 = arith.constant 1 : i32
    %0 = arith.muli %arg0, %c1_i32 : i32
    %1 = arith.addi %0, %arg1 : i32
    %c16_i32 = arith.constant 16 : i32
    %2 = arith.muli %1, %c16_i32 : i32
    %c0_i32 = arith.constant 0 : i32
    %3 = arith.cmpi eq, %arg1, %c0_i32 : i32
    %4 = arith.extui %3 : i1 to i32
    %cst = arith.constant 0xFF800000 : f32
    %c0_i32_0 = arith.constant 0 : i32
    %5 = arith.cmpi ne, %4, %c0_i32_0 : i32
    scf.if %5 {
      %74 = vector.broadcast %cst : f32 to vector<8x16xf32>
      %c0_52 = arith.constant 0 : index
      %c0_53 = arith.constant 0 : index
      %75 = vector.load %arg5[%c0_52, %c0_53] : memref<8x16xf32, #tpu.memory_space<vmem>>, vector<8x16xf32>
      tpu.vector_store %arg5[%c0_52, %c0_53], %74 {strides = array<i32>} : memref<8x16xf32, #tpu.memory_space<vmem>>, vector<8x16xf32>,
      %cst_54 = arith.constant 0.000000e+00 : f32
      %76 = vector.broadcast %cst_54 : f32 to vector<8x16xf32>
      %c0_55 = arith.constant 0 : index
      %c0_56 = arith.constant 0 : index
      %77 = vector.load %arg6[%c0_55, %c0_56] : memref<8x16xf32, #tpu.memory_space<vmem>>, vector<8x16xf32>
      tpu.vector_store %arg6[%c0_55, %c0_56], %76 {strides = array<i32>} : memref<8x16xf32, #tpu.memory_space<vmem>>, vector<8x16xf32>,
      %cst_57 = arith.constant 0.000000e+00 : f32
      %78 = vector.broadcast %cst_57 : f32 to vector<1x1xf32>
      %c0_58 = arith.constant 0 : index
      %c0_59 = arith.constant 0 : index
      %79 = vector.load %arg8[%c0_58, %c0_59] : memref<1x1xf32, #tpu.memory_space<vmem>>, vector<1x1xf32>
      tpu.vector_store %arg8[%c0_58, %c0_59], %78 {strides = array<i32>} : memref<1x1xf32, #tpu.memory_space<vmem>>, vector<1x1xf32>,
    } else {
    }
    %6 = tpu.iota {dimensions = array<i32: 1>} : vector<8x16xi32>
    %7 = tpu.iota {dimensions = array<i32: 0>} : vector<8x16xi32>
    %8 = arith.subi %6, %7 : vector<8x16xi32>
    %9 = vector.broadcast %2 : i32 to vector<8x16xi32>
    %10 = arith.subi %8, %9 : vector<8x16xi32>
    %c0 = arith.constant 0 : index
    %c0_1 = arith.constant 0 : index
    %11 = vector.load %arg5[%c0, %c0_1] : memref<8x16xf32, #tpu.memory_space<vmem>>, vector<8x16xf32>
    %c0_2 = arith.constant 0 : index
    %c0_3 = arith.constant 0 : index
    %12 = vector.load %arg7[%c0_2, %c0_3] : memref<8x16xf32, #tpu.memory_space<vmem>>, vector<8x16xf32>
    tpu.vector_store %arg7[%c0_2, %c0_3], %11 {strides = array<i32>} : memref<8x16xf32, #tpu.memory_space<vmem>>, vector<8x16xf32>,
    %c0_4 = arith.constant 0 : index
    %c0_5 = arith.constant 0 : index
    %13 = vector.load %arg2[%c0_4, %c0_5] : memref<16x16xf32, #tpu.memory_space<vmem>>, vector<8x16xf32>
    %c0_6 = arith.constant 0 : index
    %c0_7 = arith.constant 0 : index
    %14 = vector.load %arg3[%c0_6, %c0_7] : memref<16x1xf32, #tpu.memory_space<vmem>>, vector<8x1xf32>
    %15 = vector.broadcast %14 : vector<8x1xf32> to vector<8x16xf32>
    %16 = arith.subf %13, %15 : vector<8x16xf32>
    %c0_i32_8 = arith.constant 0 : i32
    %17 = vector.broadcast %c0_i32_8 : i32 to vector<8x16xi32>
    %18 = arith.cmpi eq, %10, %17 : vector<8x16xi32>
    %cst_9 = arith.constant 0.000000e+00 : f32
    %19 = vector.broadcast %cst_9 : f32 to vector<8x16xf32>
    %20 = arith.select %18, %16, %19 : vector<8x16xi1>, vector<8x16xf32>
    %c8 = arith.constant 8 : index
    %c0_10 = arith.constant 0 : index
    %21 = vector.load %arg2[%c8, %c0_10] : memref<16x16xf32, #tpu.memory_space<vmem>>, vector<8x16xf32>
    %c8_11 = arith.constant 8 : index
    %c0_12 = arith.constant 0 : index
    %22 = vector.load %arg3[%c8_11, %c0_12] : memref<16x1xf32, #tpu.memory_space<vmem>>, vector<8x1xf32>
    %23 = vector.broadcast %22 : vector<8x1xf32> to vector<8x16xf32>
    %24 = arith.subf %21, %23 : vector<8x16xf32>
    %c8_i32 = arith.constant 8 : i32
    %25 = vector.broadcast %c8_i32 : i32 to vector<8x16xi32>
    %26 = arith.cmpi eq, %10, %25 : vector<8x16xi32>
    %cst_13 = arith.constant 0.000000e+00 : f32
    %27 = vector.broadcast %cst_13 : f32 to vector<8x16xf32>
    %28 = arith.select %26, %24, %27 : vector<8x16xi1>, vector<8x16xf32>
    %29 = arith.addf %20, %28 : vector<8x16xf32>
    %30 = arith.maximumf %16, %24 : vector<8x16xf32>
    %c0_14 = arith.constant 0 : index
    %c0_15 = arith.constant 0 : index
    %31 = vector.load %arg8[%c0_14, %c0_15] : memref<1x1xf32, #tpu.memory_space<vmem>>, vector<1x1xf32>
    %32 = vector.shape_cast %29 : vector<8x16xf32> to vector<1x8x16xf32>
    %cst_16 = arith.constant dense<0.000000e+00> : vector<1xf32>
    %33 = vector.multi_reduction <add>, %32, %cst_16 [1, 2] : vector<1x8x16xf32> to vector<1xf32>
    %34 = vector.shape_cast %33 : vector<1xf32> to vector<1x1x1xf32>
    %35 = vector.extract %34[0, 0, 0] : f32 from vector<1x1x1xf32>
    %36 = vector.broadcast %35 : f32 to vector<1x1xf32>
    %37 = arith.addf %31, %36 : vector<1x1xf32>
    %c0_17 = arith.constant 0 : index
    %c0_18 = arith.constant 0 : index
    %38 = vector.load %arg8[%c0_17, %c0_18] : memref<1x1xf32, #tpu.memory_space<vmem>>, vector<1x1xf32>
    tpu.vector_store %arg8[%c0_17, %c0_18], %37 {strides = array<i32>} : memref<1x1xf32, #tpu.memory_space<vmem>>, vector<1x1xf32>,
    %c0_19 = arith.constant 0 : index
    %c0_20 = arith.constant 0 : index
    %39 = vector.load %arg7[%c0_19, %c0_20] : memref<8x16xf32, #tpu.memory_space<vmem>>, vector<8x16xf32>
    %40 = arith.maximumf %39, %30 : vector<8x16xf32>
    %c0_21 = arith.constant 0 : index
    %c0_22 = arith.constant 0 : index
    %41 = vector.load %arg7[%c0_21, %c0_22] : memref<8x16xf32, #tpu.memory_space<vmem>>, vector<8x16xf32>
    tpu.vector_store %arg7[%c0_21, %c0_22], %40 {strides = array<i32>} : memref<8x16xf32, #tpu.memory_space<vmem>>, vector<8x16xf32>,
    %c0_23 = arith.constant 0 : index
    %c0_24 = arith.constant 0 : index
    %42 = vector.load %arg5[%c0_23, %c0_24] : memref<8x16xf32, #tpu.memory_space<vmem>>, vector<8x16xf32>
    %c0_25 = arith.constant 0 : index
    %c0_26 = arith.constant 0 : index
    %43 = vector.load %arg7[%c0_25, %c0_26] : memref<8x16xf32, #tpu.memory_space<vmem>>, vector<8x16xf32>
    %cst_27 = arith.constant 0xFF800000 : f32
    %44 = vector.broadcast %cst_27 : f32 to vector<8x16xf32>
    %45 = arith.cmpf oeq, %42, %44 : vector<8x16xf32>
    %46 = arith.subf %42, %43 : vector<8x16xf32>
    %47 = math.exp %46 : vector<8x16xf32>
    %cst_28 = arith.constant 0.000000e+00 : f32
    %48 = vector.broadcast %cst_28 : f32 to vector<8x16xf32>
    %49 = arith.select %45, %48, %47 : vector<8x16xi1>, vector<8x16xf32>
    %c0_29 = arith.constant 0 : index
    %c0_30 = arith.constant 0 : index
    %50 = vector.load %arg6[%c0_29, %c0_30] : memref<8x16xf32, #tpu.memory_space<vmem>>, vector<8x16xf32>
    %51 = arith.mulf %50, %49 : vector<8x16xf32>
    %c0_31 = arith.constant 0 : index
    %c0_32 = arith.constant 0 : index
    %52 = vector.load %arg6[%c0_31, %c0_32] : memref<8x16xf32, #tpu.memory_space<vmem>>, vector<8x16xf32>
    tpu.vector_store %arg6[%c0_31, %c0_32], %51 {strides = array<i32>} : memref<8x16xf32, #tpu.memory_space<vmem>>, vector<8x16xf32>,
    %c0_33 = arith.constant 0 : index
    %c0_34 = arith.constant 0 : index
    %53 = vector.load %arg5[%c0_33, %c0_34] : memref<8x16xf32, #tpu.memory_space<vmem>>, vector<8x16xf32>
    tpu.vector_store %arg5[%c0_33, %c0_34], %43 {strides = array<i32>} : memref<8x16xf32, #tpu.memory_space<vmem>>, vector<8x16xf32>,
    %c0_35 = arith.constant 0 : index
    %c0_36 = arith.constant 0 : index
    %54 = vector.load %arg7[%c0_35, %c0_36] : memref<8x16xf32, #tpu.memory_space<vmem>>, vector<8x16xf32>
    %c0_37 = arith.constant 0 : index
    %c0_38 = arith.constant 0 : index
    %55 = vector.load %arg2[%c0_37, %c0_38] : memref<16x16xf32, #tpu.memory_space<vmem>>, vector<8x16xf32>
    %c0_39 = arith.constant 0 : index
    %c0_40 = arith.constant 0 : index
    %56 = vector.load %arg3[%c0_39, %c0_40] : memref<16x1xf32, #tpu.memory_space<vmem>>, vector<8x1xf32>
    %57 = vector.broadcast %56 : vector<8x1xf32> to vector<8x16xf32>
    %58 = arith.subf %55, %57 : vector<8x16xf32>
    %59 = arith.subf %58, %54 : vector<8x16xf32>
    %60 = math.exp %59 : vector<8x16xf32>
    %c8_41 = arith.constant 8 : index
    %c0_42 = arith.constant 0 : index
    %61 = vector.load %arg2[%c8_41, %c0_42] : memref<16x16xf32, #tpu.memory_space<vmem>>, vector<8x16xf32>
    %c8_43 = arith.constant 8 : index
    %c0_44 = arith.constant 0 : index
    %62 = vector.load %arg3[%c8_43, %c0_44] : memref<16x1xf32, #tpu.memory_space<vmem>>, vector<8x1xf32>
    %63 = vector.broadcast %62 : vector<8x1xf32> to vector<8x16xf32>
    %64 = arith.subf %61, %63 : vector<8x16xf32>
    %65 = arith.subf %64, %54 : vector<8x16xf32>
    %66 = math.exp %65 : vector<8x16xf32>
    %67 = arith.addf %60, %66 : vector<8x16xf32>
    %c0_45 = arith.constant 0 : index
    %c0_46 = arith.constant 0 : index
    %68 = vector.load %arg6[%c0_45, %c0_46] : memref<8x16xf32, #tpu.memory_space<vmem>>, vector<8x16xf32>
    %69 = arith.addf %68, %67 : vector<8x16xf32>
    %c0_47 = arith.constant 0 : index
    %c0_48 = arith.constant 0 : index
    %70 = vector.load %arg6[%c0_47, %c0_48] : memref<8x16xf32, #tpu.memory_space<vmem>>, vector<8x16xf32>
    tpu.vector_store %arg6[%c0_47, %c0_48], %69 {strides = array<i32>} : memref<8x16xf32, #tpu.memory_space<vmem>>, vector<8x16xf32>,
    %c0_i32_49 = arith.constant 0 : i32
    %71 = arith.cmpi eq, %arg1, %c0_i32_49 : i32
    %72 = arith.extui %71 : i1 to i32
    %cst_50 = arith.constant 0xFF800000 : f32
    %c0_i32_51 = arith.constant 0 : i32
    %73 = arith.cmpi ne, %72, %c0_i32_51 : i32
    scf.if %73 {
      %c0_52 = arith.constant 0 : index
      %c0_53 = arith.constant 0 : index
      %74 = vector.load %arg5[%c0_52, %c0_53] : memref<8x16xf32, #tpu.memory_space<vmem>>, vector<8x16xf32>
      %75 = vector.shape_cast %74 : vector<8x16xf32> to vector<1x8x16xf32>
      %cst_54 = arith.constant dense<0xFF800000> : vector<1xf32>
      %76 = vector.multi_reduction <maximumf>, %75, %cst_54 [1, 2] : vector<1x8x16xf32> to vector<1xf32>
      %77 = vector.shape_cast %76 : vector<1xf32> to vector<1x1x1xf32>
      %78 = vector.extract %77[0, 0, 0] : f32 from vector<1x1x1xf32>
      %79 = vector.broadcast %cst_50 : f32 to vector<8x16xf32>
      %80 = arith.cmpf oeq, %74, %79 : vector<8x16xf32>
      %c0_55 = arith.constant 0 : index
      %c0_56 = arith.constant 0 : index
      %81 = vector.load %arg6[%c0_55, %c0_56] : memref<8x16xf32, #tpu.memory_space<vmem>>, vector<8x16xf32>
      %82 = vector.broadcast %78 : f32 to vector<8x16xf32>
      %83 = arith.subf %74, %82 : vector<8x16xf32>
      %84 = math.exp %83 : vector<8x16xf32>
      %85 = arith.mulf %81, %84 : vector<8x16xf32>
      %cst_57 = arith.constant 0.000000e+00 : f32
      %86 = vector.broadcast %cst_57 : f32 to vector<8x16xf32>
      %87 = arith.select %80, %86, %85 : vector<8x16xi1>, vector<8x16xf32>
      %88 = vector.shape_cast %87 : vector<8x16xf32> to vector<1x8x16xf32>
      %cst_58 = arith.constant dense<0.000000e+00> : vector<1xf32>
      %89 = vector.multi_reduction <add>, %88, %cst_58 [1, 2] : vector<1x8x16xf32> to vector<1xf32>
      %90 = vector.shape_cast %89 : vector<1xf32> to vector<1x1x1xf32>
      %91 = vector.extract %90[0, 0, 0] : f32 from vector<1x1x1xf32>
      %c0_59 = arith.constant 0 : index
      %c0_60 = arith.constant 0 : index
      %92 = vector.load %arg8[%c0_59, %c0_60] : memref<1x1xf32, #tpu.memory_space<vmem>>, vector<1x1xf32>
      %93 = vector.shape_cast %92 : vector<1x1xf32> to vector<1x1x1xf32>
      %cst_61 = arith.constant dense<0.000000e+00> : vector<1xf32>
      %94 = vector.multi_reduction <add>, %93, %cst_61 [1, 2] : vector<1x1x1xf32> to vector<1xf32>
      %95 = vector.shape_cast %94 : vector<1xf32> to vector<1x1x1xf32>
      %96 = vector.extract %95[0, 0, 0] : f32 from vector<1x1x1xf32>
      %97 = tpu.iota {dimensions = array<i32: 0>} : vector<8x128xi32>
      %c0_i32_62 = arith.constant 0 : i32
      %98 = vector.broadcast %c0_i32_62 : i32 to vector<8x128xi32>
      %99 = arith.cmpi eq, %97, %98 : vector<8x128xi32>
      %c1_i32_63 = arith.constant 1 : i32
      %100 = vector.broadcast %c1_i32_63 : i32 to vector<8x128xi32>
      %101 = arith.cmpi eq, %97, %100 : vector<8x128xi32>
      %102 = vector.broadcast %78 : f32 to vector<8x128xf32>
      %103 = vector.broadcast %91 : f32 to vector<8x128xf32>
      %104 = arith.select %101, %102, %103 : vector<8x128xi1>, vector<8x128xf32>
      %105 = vector.broadcast %96 : f32 to vector<8x128xf32>
      %106 = arith.select %99, %105, %104 : vector<8x128xi1>, vector<8x128xf32>
      %c0_64 = arith.constant 0 : index
      %c0_65 = arith.constant 0 : index
      %107 = vector.load %arg4[%c0_64, %c0_65] : memref<8x128xf32, #tpu.memory_space<vmem>>, vector<8x128xf32>
      tpu.vector_store %arg4[%c0_64, %c0_65], %106 {strides = array<i32>} : memref<8x128xf32, #tpu.memory_space<vmem>>, vector<8x128xf32>,
    } else {
    }
    return
  }
  func.func @transform_0(%arg0: i32, %arg1: i32) -> (i32, i32) {
    %c1_i32 = arith.constant 1 : i32
    %0 = arith.muli %arg0, %c1_i32 : i32
    %1 = arith.addi %0, %arg1 : i32
    %c0_i32 = arith.constant 0 : i32
    %c0_i32_0 = arith.constant 0 : i32
    return %1, %c0_i32 : i32, i32
  }
  func.func @transform_1(%arg0: i32, %arg1: i32) -> (i32, i32) {
    %c1_i32 = arith.constant 1 : i32
    %0 = arith.muli %arg0, %c1_i32 : i32
    %1 = arith.addi %0, %arg1 : i32
    %c0_i32 = arith.constant 0 : i32
    %c0_i32_0 = arith.constant 0 : i32
    return %1, %c0_i32 : i32, i32
  }
  func.func @transform_2(%arg0: i32, %arg1: i32) -> (i32, i32) {
    %c0_i32 = arith.constant 0 : i32
    %c0_i32_0 = arith.constant 0 : i32
    return %arg0, %c0_i32 : i32, i32
  }
}

</mosaic_0001>

<bundles_post_ra>
// kernel: tpu_custom_call.1
= control target key start
LH: loop header
LB: loop body
LE: loop exit
PB: predicated region body
PF: predicated region fallthrough
CT: control target
= control target key end

     0   :  { %vm62_vm0 = vcmask 130048   ;;  %v269_v1 = vmov 0   ;;  %v270_v2 = vmov -inf   ;;  %s329_s0 = inlined_call_operand.vmem [shape: f32[16,16], index: 0, kind: input, shape index: {}]   ;;  %s330_s1 = inlined_call_operand.vmem [shape: f32[16,1], index: 1, kind: input, shape index: {}]   ;;  %s331_s2 = inlined_call_operand.hbm [shape: f32[8,128], index: 2, kind: output, shape index: {}]  }
   0x1   :  { %v78_v0 = vld [vmem:[%s330_s1] sm:$0xff]  ;;  %235 = vset.pattern.permute.xlu0 %v269_v1  ;;  %63 = vst.msk [vmem:[#allocation2] sm:$0xff] %vm62_vm0, %v270_v2  ;;  %236 = vset.pattern.permute.xlu1 %v269_v1 }
   0x2   :  { %7 = vsyncpa [#allocation7], 0  ;;  %81 = vperm.xlu0 %235, %v78_v0   ;;  %v88_v3 = vld [vmem:[%s330_s1 + $0x8] sm:$0xff]  ;;  %v271_v5 = vmov 0.0   ;;  %v67_v6 = vlaneseq  ;;  %v77_v11 = vld [vmem:[%s329_s0] sm:$0xff]  ;;  %vm65_vm4 = vcmask 0  }
   0x3   :  { %64 = vst.msk [vmem:[#allocation3] sm:$0xff] %vm62_vm0, %v271_v5  ;;  %v87_v12 = vld [vmem:[%s329_s0 + $0x8] sm:$0xff]  ;;  %s272_s17 = smov [#allocation6]  }
   0x4   :  { %v68_v7 = vand.u32 127, %v67_v6  ;;  %v297_v8 = vshrl.u32 %v67_v6, 7  ;;  %66 = vst.msk [vmem:[#allocation5] sm:$0x1] %vm65_vm4, %v271_v5  ;;  %s203_s18 = sshll.u32 %s272_s17, 4  ;;  %s204_s18 = int_to_ptr.vmem [resolvable:$true] %s203_s18 }
   0x5   :  { %s245_s21 = scalar_lea.vmem %s204_s18, 128  ;;  %p250_p1 = scmp.lt.s32.totalorder %s204_s18, %s204_s18 }
   0x6   :  { %91 = vperm.xlu0 %235, %v88_v3   ;;  %v71_v10 = vsub.s32 %v68_v7, %v297_v8  ;;  %vm191_vm6 = vcmp.eq.s32.totalorder %v297_v8, 1  ;;  %vm190_vm7 = vcmp.eq.s32.totalorder %v297_v8, 0  ;;  %p246_p0 = scmp.ne.s32.totalorder %s204_s18, %s245_s21  ;;  %p251_p2 = scmp.lt.s32.totalorder %s245_s21, %s245_s21 }
   0x8   :  { %v74_v4 = vld [vmem:[#allocation2] sm:$0xff]  ;;  %vm85_vm1 = vcmp.eq.s32.totalorder %v71_v10, 0  ;;  %vm95_vm2 = vcmp.eq.s32.totalorder %v71_v10, 8  ;;  %p252_p3 = por %p251_p2, %p250_p1 }
   0x9   :  { %76 = vst.msk [vmem:[#allocation4] sm:$0xff] %vm62_vm0, %v74_v4  ;;  %vm119_vm3 = vcmp.eq.f32.partialorder %v74_v4, -inf }
   0xa   :  { %133 = vperm.xlu0 %235, %v78_v0   ;;  %v124_v28 = vld [vmem:[#allocation3] sm:$0xff]  ;;  %p253_p4 = pnand %p252_p3, %p246_p0 }
   0xb   :  { %v99_v59 = vld [vmem:[#allocation5] sm:$0x1] }
  0x10   :  { %v114_v16 = vld [vmem:[#allocation4] sm:$0xff] }
  0x81   :  { %v82_v9 = vpop.permute.xlu0 %81 }
  0x82   :  { %v84_v13 = vsub.f32 %v77_v11, %v82_v9 }
  0x84   :  { %v86_v17 = vsel %vm85_vm1, %v84_v13, 0.0 }
  0x85   :  { %v92_v14 = vpop.permute.xlu0 %91 }
  0x86   :  { %v94_v15 = vsub.f32 %v87_v12, %v92_v14 }
  0x88   :  { %v96_v18 = vsel %vm95_vm2, %v94_v15, 0.0  ;;  %v98_v19 = vmax.f32 %v84_v13, %v94_v15 }
  0x89   :  { %v97_v20 = vadd.f32 %v96_v18, %v86_v17  ;;  %v134_v39 = vpop.permute.xlu0 %133 }
  0x8a   :  { %v115_v21 = vmax.f32 %v114_v16, %v98_v19  ;;  %v136_v40 = vsub.f32 %v77_v11, %v134_v39 }
  0x8b   :  { %v100_v22 = vsel %vm62_vm0, %v97_v20, 0.0 }
  0x8c   :  { %116 = vst.msk [vmem:[#allocation4] sm:$0xff] %vm62_vm0, %v115_v21  ;;  %101 = vadd.xlane.f32.xlu1 %v100_v22 }
  0x93   :  { %v118_v23 = vld [vmem:[#allocation4] sm:$0xff] }
  0x94   :  { %v120_v24 = vsub.f32 %v74_v4, %v118_v23  ;;  %127 = vst.msk [vmem:[#allocation2] sm:$0xff] %vm62_vm0, %v118_v23  ;;  %v137_v43 = vsub.f32 %v136_v40, %v118_v23 }
  0x96   :  { %v121_v25 = vmul.f32 1.442695, %v120_v24  ;;  %v138_v48 = vmul.f32 1.442695, %v137_v43 }
  0x98   :  { %237 = vpow2.f32 %v121_v25 }
  0x99   :  { %239 = vpow2.f32 %v138_v48 }
  0x9b   :  { %v158_v26 = vld [vmem:[#allocation2] sm:$0xff] }
  0x9c   :  { %v159_v27 = vsel %vm62_vm0, %v158_v26, -inf  ;;  %vm169_vm5 = vcmp.eq.f32.partialorder %v158_v26, -inf }
  0x9d   :  { %160 = vmax.xlane.f32.xlu1 %v159_v27 }
  0xa2   :  { %v238_v29 = vpop.eup %237 }
  0xa3   :  { %v123_v30 = vsel %vm119_vm3, 0.0, %v238_v29  ;;  %v240_v54 = vpop.eup %239 }
  0xa4   :  { %v125_v31 = vmul.f32 %v124_v28, %v123_v30 }
  0xa6   :  { %126 = vst.msk [vmem:[#allocation3] sm:$0xff] %vm62_vm0, %v125_v31 }
  0xad   :  { %v152_v57 = vld [vmem:[#allocation3] sm:$0xff] }
  0xae   :  { %144 = vperm.xlu1 %236, %v88_v3  }
 0x119   :  { %v102_v32 = vpop.xlane.xlu1 %101 }
 0x11a   :  { %v103_v33 = vrot.slane %v102_v32, 4 }
 0x11c   :  { %v104_v34 = vadd.f32 %v103_v33, %v102_v32 }
 0x11e   :  { %v105_v35 = vrot.slane %v104_v34, 2 }
 0x120   :  { %v106_v36 = vadd.f32 %v105_v35, %v104_v34 }
 0x122   :  { %v107_v37 = vrot.slane %v106_v36, 1 }
 0x124   :  { %v108_v38 = vadd.f32 %v107_v37, %v106_v36 }
 0x126   :  { %223 = vpush %v108_v38 }
 0x12a   :  { %v161_v41 = vpop.xlane.xlu1 %160 }
 0x12b   :  { %v162_v42 = vrot.slane %v161_v41, 4 }
 0x12d   :  { %v163_v44 = vmax.f32 %v161_v41, %v162_v42 }
 0x12e   :  { %v145_v45 = vpop.permute.xlu1 %144 }
 0x12f   :  { %v164_v46 = vrot.slane %v163_v44, 2  ;;  %v147_v47 = vsub.f32 %v87_v12, %v145_v45 }
 0x131   :  { %v148_v49 = vsub.f32 %v147_v47, %v118_v23  ;;  %v165_v50 = vmax.f32 %v163_v44, %v164_v46 }
 0x133   :  { %v149_v51 = vmul.f32 1.442695, %v148_v49  ;;  %v166_v52 = vrot.slane %v165_v50, 1 }
 0x135   :  { %241 = vpow2.f32 %v149_v51  ;;  %v167_v53 = vmax.f32 %v165_v50, %v166_v52 }
 0x137   :  { %225 = vpush %v167_v53 }
 0x13f   :  { %v242_v55 = vpop.eup %241 }
 0x140   :  { %v151_v56 = vadd.f32 %v242_v55, %v240_v54 }
 0x142   :  { %v153_v58 = vadd.f32 %v152_v57, %v151_v56 }
 0x144   :  { %154 = vst.msk [vmem:[#allocation3] sm:$0xff] %vm62_vm0, %v153_v58 }
 0x14b   :  { %v170_v2 = vld [vmem:[#allocation3] sm:$0xff] }
 0x157   :  { %s224_s0 = spop %223 }
 0x158   :  { %v110_v60 = vstv %s224_s0 }
 0x159   :  { %v111_v61 = vadd.f32 %v110_v60, %v99_v59 }
 0x15b   :  { %113 = vst.msk [vmem:[#allocation5] sm:$0x1] %vm65_vm4, %v111_v61 }
 0x162   :  { %v187_v14 = vld [vmem:[#allocation5] sm:$0x1] }
 0x168   :  { %s226_s16 = spop %225 }
 0x169   :  { %v171_v62 = vstv %s226_s16 }
 0x16a   :  { %v172_v63 = vsub.f32 %v158_v26, %v171_v62 }
 0x16c   :  { %v173_v0 = vmul.f32 1.442695, %v172_v63 }
 0x16e   :  { %243 = vpow2.f32 %v173_v0 }
 0x178   :  { %v244_v1 = vpop.eup %243 }
 0x179   :  { %v175_v3 = vmul.f32 %v244_v1, %v170_v2 }
 0x17b   :  { %v176_v4 = vsel %vm169_vm5, 0.0, %v175_v3 }
 0x17c   :  { %v177_v5 = vsel %vm62_vm0, %v176_v4, 0.0 }
 0x17d   :  { %178 = vadd.xlane.f32.xlu0 %v177_v5 }
 0x20a   :  { %v179_v6 = vpop.xlane.xlu0 %178 }
 0x20b   :  { %v180_v7 = vrot.slane %v179_v6, 4 }
 0x20d   :  { %v181_v9 = vadd.f32 %v180_v7, %v179_v6 }
 0x20f   :  { %v182_v10 = vrot.slane %v181_v9, 2 }
 0x211   :  { %v183_v11 = vadd.f32 %v182_v10, %v181_v9 }
 0x213   :  { %v184_v12 = vrot.slane %v183_v11, 1 }
 0x215   :  { %v185_v13 = vadd.f32 %v184_v12, %v183_v11 }
 0x217   :  { %227 = vpush %v185_v13 }
 0x218   :  { %229 = vpush %v187_v14 }
 0x248   :  { %s228_s19 = spop %227 }
 0x249   :  { %v192_v15 = vstv %s228_s19  ;;  %s230_s20 = spop %229 }
 0x24a   :  { %v193_v16 = vsel %vm191_vm6, %v171_v62, %v192_v15  ;;  %v194_v17 = vstv %s230_s20 }
 0x24b   :  { %v195_v18 = vsel %vm190_vm7, %v194_v17, %v193_v16 }
 0x24c   :  { %196 = vst [vmem:[#allocation6] sm:$0xff] %v195_v18 }
 0x24d   :  { %256 = shalt.err (!%p253_p4)
}
 0x24e   :  { %s257_s24 = scalar_lea.hbm %s331_s2, 128 }
 0x24f   :  { %p258_p5 = scmp.ne.s32.totalorder %s331_s2, %s257_s24  ;;  %p261_p6 = scmp.lt.u32.totalorder %s257_s24, %s331_s2 }
 0x251   :  { %p263_p7 = pnand %p261_p6, %p258_p5 }
 0x253   :  { %266 = shalt.err (!%p263_p7)
}
 0x254   :  { %206 = dma.vmem_to_hbm [thread:$0]  %s204_s18, 128, %s331_s2, [#allocation7]  }
 0x255   :  { %267 = dma.done.wait [#allocation7], 128  }
 0x256   :  { %268 = vsyncadd [#allocation7], 4294967168 }
 0x257   :  { %210 = vsyncpa [#allocation7], 1 }

</bundles_post_ra>
